<compile_context>
chip_gen: v5e
topology: v5e:2x2
jax: 0.10.0
libtpu: 0.0.40
codegen_flags: <defaults>
</compile_context>

<pallas_src>
import functools

import jax
import jax.numpy as jnp
from jax import lax
from jax.experimental import pallas as pl
from jax.experimental.pallas import tpu as pltpu

_INV_SQRT2 = 0.7071067811865476
_TARGET_BLOCK_BYTES = 8 * 1024 * 1024   # ~8 MiB input block (x2 double-buffered)
_VMEM_LIMIT_BYTES = 40 * 1024 * 1024    # explicit: > v5e's 16 MiB scoped default


def _gelu_f32(m):
    m = m.astype(jnp.float32)
    return 0.5 * m * (1.0 + lax.erf(m * jnp.float32(_INV_SQRT2)))


def _round_up(a, b):
    return ((a + b - 1) // b) * b


def _sublane_multiple(dtype):
    # 8 rows per sublane tile for f32, 16 for bf16/f16 (packed sublanes).
    return max(8, 32 // jnp.dtype(dtype).itemsize)


def _make_pool_gelu_kernel(*, K, TK, TR, n_k, acc_dtype, strip_rows):
    """Kernel body specialized on the static tiling parameters."""
    assert TK % 128 == 0
    n_chunks = TK // 128
    last_valid = K - (n_k - 1) * TK            # valid lanes in the last k block
    n_common = last_valid // 128               # chunks valid on *every* k step
    tail_lanes = last_valid - n_common * 128   # ragged lanes of the last chunk
    neg = float(jnp.finfo(acc_dtype).min)
    strips = [(r0, min(r0 + strip_rows, TR)) for r0 in range(0, TR, strip_rows)]

    def chunk_loop(x_ref, rows, part, lo, hi):
        if hi <= lo:
            return part

        def body(c, p):
            off = pl.multiple_of(c * 128, 128)
            return jnp.maximum(p, x_ref[rows, pl.ds(off, 128)].astype(acc_dtype))

        return lax.fori_loop(lo, hi, body, part, unroll=min(8, hi - lo))

    def tail_chunk_max(x_ref, rows, part):
        lo = n_common * 128
        chunk = x_ref[rows, lo:lo + 128].astype(acc_dtype)
        lane = lax.broadcasted_iota(jnp.int32, chunk.shape, 1)
        return jnp.maximum(part, jnp.where(lane < tail_lanes, chunk, neg))

    def finalize(part, o_ref, rows):
        m = jnp.max(part, axis=-1, keepdims=True)       # single XLU reduce/row
        o_ref[rows, :] = _gelu_f32(m).astype(o_ref.dtype)

    if n_k == 1:
        # Whole reduction fits one block: no scratch, no accumulator traffic.
        def kernel_single(x_ref, o_ref):
            for r0, r1 in strips:
                rows = slice(r0, r1)
                part = jnp.full((r1 - r0, 128), neg, acc_dtype)
                part = chunk_loop(x_ref, rows, part, 0, n_common)
                if tail_lanes > 0:
                    part = tail_chunk_max(x_ref, rows, part)
                finalize(part, o_ref, rows)

        return kernel_single, False

    def kernel_multi(x_ref, o_ref, acc_ref):
        k = pl.program_id(1)

        @pl.when(k == 0)
        def _init():
            acc_ref[...] = jnp.full((TR, 128), neg, acc_dtype)

        for r0, r1 in strips:
            rows = slice(r0, r1)

            # Chunks that are fully in-bounds on every reduction step.
            if n_common > 0:
                acc_ref[rows, :] = chunk_loop(
                    x_ref, rows, acc_ref[rows, :], 0, n_common)

            # Remaining chunks are fully valid only on non-last steps.
            if n_chunks > n_common:
                @pl.when(k < n_k - 1)
                def _full_chunks(rows=rows):
                    acc_ref[rows, :] = chunk_loop(
                        x_ref, rows, acc_ref[rows, :], n_common, n_chunks)

            # Ragged final chunk on the last step: mask OOB lanes with -max.
            if tail_lanes > 0:
                @pl.when(k == n_k - 1)
                def _ragged_chunk(rows=rows):
                    acc_ref[rows, :] = tail_chunk_max(
                        x_ref, rows, acc_ref[rows, :])

        @pl.when(k == n_k - 1)
        def _finalize():
            for r0, r1 in strips:
                rows = slice(r0, r1)
                finalize(acc_ref[rows, :], o_ref, rows)

    return kernel_multi, True


@functools.partial(jax.jit, static_argnames=("max_tr", "max_tk"))
def _pallas_pool_gelu(x, max_tr=1024, max_tk=4096):
    """x: (N, C, H, W) -> (N, C, 1, 1). AdaptiveMaxPool2d(1) + exact GELU."""
    assert x.ndim == 4
    assert jnp.issubdtype(x.dtype, jnp.floating), "GELU expects a float dtype"
    N, C, H, W = x.shape
    R, K = N * C, H * W
    x2d = x.reshape(R, K)

    itemsize = jnp.dtype(x.dtype).itemsize
    row_align = _sublane_multiple(x.dtype)

    # Lane (reduction) tile: multiple of 128, capped at max_tk.
    TK = min(_round_up(K, 128), max_tk)
    assert TK % 128 == 0

    # Row tile: multiple of the sublane packing, capped by max_tr and an
    # ~8 MiB input-block budget (double-buffered it stays well inside VMEM).
    budget_rows = max(row_align,
                      (_TARGET_BLOCK_BYTES // (TK * itemsize))
                      // row_align * row_align)
    TR = min(_round_up(R, row_align), max_tr, budget_rows)
    # Megacore: guarantee >= 2 row tiles whenever R allows it, so the
    # "parallel" row axis can be sharded across TensorCores (v7x has 2/chip).
    if pl.cdiv(R, TR) == 1 and R > row_align:
        TR = _round_up(pl.cdiv(R, 2), row_align)

    n_r = pl.cdiv(R, TR)
    n_k = pl.cdiv(K, TK)

    # Inner row strip: keeps the live running-max value <= ~16 vregs no matter
    # how large the DMA block (TR) grows.
    strip_rows = min(TR, max(row_align, 512 // itemsize))

    kernel, needs_scratch = _make_pool_gelu_kernel(
        K=K, TK=TK, TR=TR, n_k=n_k, acc_dtype=x.dtype, strip_rows=strip_rows)

    if needs_scratch:
        grid = (n_r, n_k)
        in_specs = [pl.BlockSpec((TR, TK), lambda r, k: (r, k))]
        out_specs = pl.BlockSpec((TR, 1), lambda r, k: (r, 0))
        scratch_shapes = [pltpu.VMEM((TR, 128), x.dtype)]
        dim_sem = ("parallel", "arbitrary")
    else:
        grid = (n_r,)
        in_specs = [pl.BlockSpec((TR, TK), lambda r: (r, 0))]
        out_specs = pl.BlockSpec((TR, 1), lambda r: (r, 0))
        scratch_shapes = []
        dim_sem = ("parallel",)

    out2d = pl.pallas_call(
        kernel,
        out_shape=jax.ShapeDtypeStruct((R, 1), x.dtype),
        grid_spec=pltpu.PrefetchScalarGridSpec(
            num_scalar_prefetch=0,
            grid=grid,
            in_specs=in_specs,
            out_specs=out_specs,
            scratch_shapes=scratch_shapes,
        ),
        compiler_params=pltpu.CompilerParams(
            dimension_semantics=dim_sem,
            vmem_limit_bytes=_VMEM_LIMIT_BYTES),
    )(x2d)

    return out2d.reshape(N, C, 1, 1)


def _jnp_pool_gelu(x):
    """Pure-JAX reference / tiny-input fast path."""
    m = jnp.max(x, axis=(2, 3), keepdims=True)
    return _gelu_f32(m).astype(x.dtype)


def adaptive_maxpool1_gelu(x, *, min_pallas_elements=65536):
    """AdaptiveMaxPool2d(1) followed by exact GELU (matches the PyTorch Model)."""
    if x.size < min_pallas_elements:
        # pallas_call launch + per-step overhead dominates tiny inputs; let XLA
        # fuse max + gelu instead.
        return _jnp_pool_gelu(x)
    return _pallas_pool_gelu(x)


if __name__ == "__main__":
    key = jax.random.PRNGKey(0)

    # 1) The module's example shape via the dispatcher (tiny -> jnp fast path).
    x1 = jax.random.normal(key, (1, 3, 1, 32), dtype=jnp.float32)
    out1 = adaptive_maxpool1_gelu(x1)
    jax.block_until_ready(out1)
    assert out1.shape == (1, 3, 1, 1)
    assert jnp.allclose(out1, _jnp_pool_gelu(x1), atol=1e-6, rtol=1e-6)

    # 2) Same tiny shape forced through Pallas (single-step, ragged rows+lanes).
    out1p = _pallas_pool_gelu(x1)
    jax.block_until_ready(out1p)
    assert jnp.allclose(out1p, _jnp_pool_gelu(x1), atol=1e-6, rtol=1e-6)

    # 3) Pallas path: single reduction step, 2 row tiles (megacore split).
    x2 = jax.random.normal(jax.random.PRNGKey(1), (2, 8, 32, 128), jnp.float32)
    out2 = adaptive_maxpool1_gelu(x2)
    jax.block_until_ready(out2)
    assert out2.shape == (2, 8, 1, 1)
    assert jnp.allclose(out2, _jnp_pool_gelu(x2), atol=1e-6, rtol=1e-6)

    # 4) Multi-step reduction with a ragged tail (K=2100, TK=512 -> 5 k-steps).
    x3 = jax.random.normal(jax.random.PRNGKey(2), (1, 4, 7, 300), jnp.float32)
    out3 = _pallas_pool_gelu(x3, max_tk=512)
    jax.block_until_ready(out3)
    assert jnp.allclose(out3, _jnp_pool_gelu(x3), atol=1e-6, rtol=1e-6)

    # 5) bf16 path (dtype-aware sublane alignment, accumulate in input dtype).
    x4 = jax.random.normal(jax.random.PRNGKey(3), (2, 16, 16, 128),
                           jnp.bfloat16)
    out4 = adaptive_maxpool1_gelu(x4)
    jax.block_until_ready(out4)
    assert jnp.allclose(out4.astype(jnp.float32),
                        _jnp_pool_gelu(x4).astype(jnp.float32),
                        atol=1e-2, rtol=1e-2)

    print("KERNEL_OK")
</pallas_src>

<mosaic_0001>
module attributes {stable_mosaic.version = 11 : i64} {
  func.func @kernel_single(%arg0: i32, %arg1: memref<8x128xf32, #tpu.memory_space<vmem>>, %arg2: memref<8x1xf32, #tpu.memory_space<vmem>>) attributes {dimension_semantics = [#tpu.dimension_semantics<parallel>], iteration_bounds = array<i64: 1>, scalar_prefetch = 0 : i64, scratch_operands = 0 : i64, tpu.core_type = #tpu.core_type<tc>, window_params = [{transform_indices = @transform_0, window_bounds = array<i64: 8, 128>}, {transform_indices = @transform_1, window_bounds = array<i64: 8, 1>}]} {
    %cst = arith.constant -3.40282347E+38 : f32
    %0 = vector.broadcast %cst : f32 to vector<8x128xf32>
    %c0 = arith.constant 0 : index
    %c0_0 = arith.constant 0 : index
    %1 = vector.load %arg1[%c0, %c0_0] : memref<8x128xf32, #tpu.memory_space<vmem>>, vector<8x128xf32>
    %2 = tpu.iota {dimensions = array<i32: 1>} : vector<8x128xi32>
    %c32_i32 = arith.constant 32 : i32
    %3 = vector.broadcast %c32_i32 : i32 to vector<8x128xi32>
    %4 = arith.cmpi slt, %2, %3 : vector<8x128xi32>
    %cst_1 = arith.constant -3.40282347E+38 : f32
    %5 = vector.broadcast %cst_1 : f32 to vector<8x128xf32>
    %6 = arith.select %4, %1, %5 : vector<8x128xi1>, vector<8x128xf32>
    %7 = arith.maximumf %0, %6 : vector<8x128xf32>
    %cst_2 = arith.constant dense<0xFF800000> : vector<8xf32>
    %8 = vector.multi_reduction <maximumf>, %7, %cst_2 [1] : vector<8x128xf32> to vector<8xf32>
    %9 = vector.shape_cast %8 : vector<8xf32> to vector<8x1xf32>
    %cst_3 = arith.constant 5.000000e-01 : f32
    %10 = vector.broadcast %cst_3 : f32 to vector<8x1xf32>
    %11 = arith.mulf %10, %9 : vector<8x1xf32>
    %cst_4 = arith.constant 0.707106769 : f32
    %12 = vector.broadcast %cst_4 : f32 to vector<8x1xf32>
    %13 = arith.mulf %9, %12 : vector<8x1xf32>
    %14 = math.erf %13 : vector<8x1xf32>
    %cst_5 = arith.constant 1.000000e+00 : f32
    %15 = vector.broadcast %cst_5 : f32 to vector<8x1xf32>
    %16 = arith.addf %15, %14 : vector<8x1xf32>
    %17 = arith.mulf %11, %16 : vector<8x1xf32>
    %c0_6 = arith.constant 0 : index
    %c0_7 = arith.constant 0 : index
    %18 = vector.load %arg2[%c0_6, %c0_7] : memref<8x1xf32, #tpu.memory_space<vmem>>, vector<8x1xf32>
    tpu.vector_store %arg2[%c0_6, %c0_7], %17 {strides = array<i32>} : memref<8x1xf32, #tpu.memory_space<vmem>>, vector<8x1xf32>,
    return
  }
  func.func @transform_0(%arg0: i32) -> (i32, i32) {
    %c0_i32 = arith.constant 0 : i32
    %c0_i32_0 = arith.constant 0 : i32
    return %arg0, %c0_i32 : i32, i32
  }
  func.func @transform_1(%arg0: i32) -> (i32, i32) {
    %c0_i32 = arith.constant 0 : i32
    %c0_i32_0 = arith.constant 0 : i32
    return %arg0, %c0_i32 : i32, i32
  }
}

</mosaic_0001>

<bundles_post_ra>
// kernel: _pallas_pool_gelu.1
= control target key start
LH: loop header
LB: loop body
LE: loop exit
PB: predicated region body
PF: predicated region fallthrough
CT: control target
= control target key end

     0   :  { %v9_v0 = vlaneseq  ;;  %vm60_vm5 = vcmask 7168   ;;  %s122_s0 = inlined_call_operand.vmem [shape: f32[3,32], index: 0, kind: input, shape index: {}]   ;;  %s123_s1 = inlined_call_operand.vmem [shape: f32[3,1], index: 1, kind: output, shape index: {}]  }
   0x1   :  { %v8_v1 = vld [vmem:[%s122_s0] sm:$0xff] }
   0x2   :  { %v10_v2 = vand.u32 127, %v9_v0 }
   0x4   :  { %vm11_vm0 = vcmp.lt.s32.totalorder %v10_v2, 32 }
   0x5   :  { %v12_v3 = vsel %vm11_vm0, %v8_v1, -3.4028235e+38 }
   0x6   :  { %v13_v4 = vmax.f32 %v12_v3, -3.4028235e+38 }
   0x8   :  { %14 = vmax.xlane.f32.xlu0 %v13_v4 }
  0x7b   :  { %v15_v5 = vpop.xlane.xlu0 %14 }
  0x7c   :  { %v17_v6 = vmul.f32 0.70710677, %v15_v5  ;;  %v16_v42 = vmul.f32 0.5, %v15_v5 }
  0x7e   :  { %v18_v7 = vmul.f32 %v17_v6, %v17_v6 }
  0x80   :  { %v19_v8 = vmin.f32 %v18_v7, 16.0 }
  0x82   :  { %v20_v9 = vmul.f32 2.1237322e-06, %v19_v8  ;;  %v31_v10 = vmul.f32 3.8918573e-05, %v19_v8 }
  0x84   :  { %v21_v11 = vadd.f32 0.00028619796, %v20_v9  ;;  %v32_v12 = vadd.f32 0.001143296, %v31_v10 }
  0x86   :  { %v22_v13 = vmul.f32 %v21_v11, %v19_v8  ;;  %v33_v14 = vmul.f32 %v32_v12, %v19_v8 }
  0x88   :  { %v34_v15 = vadd.f32 0.014752088, %v33_v14  ;;  %v23_v16 = vadd.f32 0.0036580483, %v22_v13 }
  0x8a   :  { %v35_v17 = vmul.f32 %v34_v15, %v19_v8  ;;  %v24_v19 = vmul.f32 %v23_v16, %v19_v8 }
  0x8c   :  { %v36_v18 = vadd.f32 0.112945676, %v35_v17  ;;  %v25_v22 = vadd.f32 0.05243302, %v24_v19 }
  0x8e   :  { %v37_v20 = vmul.f32 %v36_v18, %v19_v8  ;;  %v26_v25 = vmul.f32 %v25_v22, %v19_v8 }
  0x90   :  { %v38_v21 = vadd.f32 0.4994258, %v37_v20  ;;  %v27_v26 = vadd.f32 0.18741608, %v26_v25 }
  0x92   :  { %v39_v23 = vmul.f32 %v38_v21, %v19_v8  ;;  %v28_v28 = vmul.f32 %v27_v26, %v19_v8 }
  0x94   :  { %v40_v24 = vadd.f32 1.0, %v39_v23  ;;  %v29_v32 = vadd.f32 1.1283791, %v28_v28 }
  0x96   :  { %104 = vrcp.f32 %v40_v24  ;;  %v52_v31 = vand.u32 2147483648, %v40_v24  ;;  %v50_v34 = vand.u32 2147483647, %v40_v24  ;;  %vm46_vm2 = vweird.f32 %v40_v24 }
  0x97   :  { %v30_v37 = vmul.f32 %v29_v32, %v17_v6 }
  0x98   :  { %v53_v36 = vor.u32 1.1754944e-38, %v52_v31  ;;  %vm51_vm4 = vcmp.eq.f32.partialorder %v50_v34, 8.507059e+37 }
  0x9c   :  { %v105_v27 = vpop.eup %104 }
  0x9d   :  { %v42_v29 = vmul.f32 %v105_v27, %v40_v24  ;;  %vm47_vm1 = vweird.f32 %v105_v27 }
  0x9e   :  { %vm48_vm3 = vmor %vm46_vm2, %vm47_vm1 }
  0x9f   :  { %v43_v30 = vsub.f32 1.0, %v42_v29 }
  0xa1   :  { %v44_v33 = vmul.f32 %v105_v27, %v43_v30 }
  0xa3   :  { %v45_v35 = vadd.f32 %v105_v27, %v44_v33 }
  0xa5   :  { %v49_v38 = vsel %vm48_vm3, %v105_v27, %v45_v35 }
  0xa6   :  { %v54_v39 = vsel %vm51_vm4, %v53_v36, %v49_v38 }
  0xa7   :  { %v55_v40 = vmul.f32 %v54_v39, %v30_v37 }
  0xa9   :  { %v103_v41 = vclamps-f32 %v55_v40, 1.0 }
  0xab   :  { %v58_v43 = vadd.f32 1.0, %v103_v41 }
  0xad   :  { %v59_v44 = vmul.f32 %v58_v43, %v16_v42 }
  0xaf   :  { %61 = vst.msk [vmem:[#allocation2] sm:$0xff] %vm60_vm5, %v59_v44 }
  0xb6   :  { %v80_v45 = vld [vmem:[#allocation2] sm:$0xf] }
  0xb7   :  { %81 = vst [vmem:[%s123_s1] sm:$0xf] %v80_v45 }

</bundles_post_ra>
